<compile_context>
chip_gen: v6e
topology: v6e:2x2x1
jax: 0.10.0
libtpu: 0.0.40
codegen_flags: <defaults>
</compile_context>

<pallas_src>
import jax
import jax.numpy as jnp
from jax.experimental import pallas as pl
from jax.experimental.pallas import tpu as pltpu


def _hloss_rows_kernel(x_ref, o_ref):
    """2-D path: x_ref (tile_rows, C); softmax over the lane (last) axis.

    Per-row identity:  -sum_j p_j log p_j = log(s) - sum(e*z)/s
    with z = x - max(x), e = exp(z), s = sum(e).
    """
    x = x_ref[...]                                      # native dtype (f32 / bf16)
    m = jnp.max(x, axis=-1, keepdims=True)              # max is exact in bf16
    z = x.astype(jnp.float32) - m.astype(jnp.float32)   # upcast folded into subtract
    e = jnp.exp(z)
    s = jnp.sum(e, axis=-1, keepdims=True)              # (tr, 1)
    sez = jnp.sum(e * z, axis=-1, keepdims=True)        # (tr, 1)
    # Exact divide (per-row only): the approximate EUP reciprocal was what
    # pushed the summed result past the 1e-4 tolerance.
    o_ref[...] = jnp.log(s) - sez / s                   # (tr, 1) per-row entropy


def _hloss_chw_kernel(x_ref, o_ref):
    """N-D path: x_ref (1, C, tile_pos); softmax over the sublane (C) axis."""
    x = x_ref[...]
    m = jnp.max(x, axis=1, keepdims=True)
    z = x.astype(jnp.float32) - m.astype(jnp.float32)
    e = jnp.exp(z)
    s = jnp.sum(e, axis=1, keepdims=True)                # (1, 1, tp)
    sez = jnp.sum(e * z, axis=1, keepdims=True)          # (1, 1, tp)
    o_ref[...] = jnp.log(s) - sez / s                    # lane-dense (1, 1, tp)


def hloss(x: jax.Array,
          *,
          target_tile_bytes: int = 2 * 1024 * 1024,
          vmem_limit_bytes: int = 32 * 1024 * 1024) -> jax.Array:
    """Pallas HLoss: -(softmax(x, 1) * log_softmax(x, 1)).sum() -> f32 scalar.

    NOTE: rows containing -inf logits (masked classes) produce NaN via
    0 * (-inf), exactly like the literal PyTorch expression.
    """
    if x.ndim < 2:
        raise ValueError("HLoss expects at least 2 dims (softmax over dim=1)")
    C = int(x.shape[1])
    itemsize = jnp.dtype(x.dtype).itemsize

    if x.ndim == 2:
        R = int(x.shape[0])
        if R <= 8:
            tile_rows = R                               # single block == full dim
        else:
            # ~target bytes of input per tile, multiple of 8 sublanes.
            rows_target = max(8, (target_tile_bytes // max(C * itemsize, 1)) // 8 * 8)
            # >= 2 tiles whenever R allows (v7x megacore sharding of the
            # "parallel" grid axis; harmless on single-TC v5e/v6e).
            rows_two_tiles = max(8, pl.cdiv(pl.cdiv(R, 2), 8) * 8)
            # Hard byte guard: double-buffered input + ~3 f32 full-tile temps
            # must stay well under vmem_limit_bytes.
            bytes_per_row = C * (2 * itemsize + 12)
            rows_vmem = max(8, ((vmem_limit_bytes * 3 // 4) // max(bytes_per_row, 1)) // 8 * 8)
            tile_rows = int(min(rows_target, rows_two_tiles, rows_vmem, 4096))
        num_tiles = pl.cdiv(R, tile_rows)

        per_row = pl.pallas_call(
            _hloss_rows_kernel,
            out_shape=jax.ShapeDtypeStruct((R, 1), jnp.float32),
            grid=(num_tiles,),
            in_specs=[pl.BlockSpec((tile_rows, C), lambda i: (i, 0))],
            out_specs=pl.BlockSpec((tile_rows, 1), lambda i: (i, 0)),
            compiler_params=pltpu.CompilerParams(
                dimension_semantics=("parallel",),
                vmem_limit_bytes=vmem_limit_bytes,
            ),
        )(x)
        # Tiny epilogue: R*4 bytes, negligible next to the R*C*itemsize stream.
        return jnp.sum(per_row)

    # ndim > 2: keep the native (N, C, spatial...) layout (no transpose); flatten
    # the trailing spatial dims (free, contiguous reshape) to (N, C, HW).
    N = int(x.shape[0])
    HW = 1
    for d in x.shape[2:]:
        HW *= int(d)
    x3 = x.reshape(N, C, HW)

    bytes_per_pos = C * itemsize
    if HW * bytes_per_pos <= target_tile_bytes:
        tile_pos = HW                                   # single block == full dim
    else:
        tile_pos = max(128, (target_tile_bytes // max(bytes_per_pos, 1)) // 128 * 128)
        # VMEM byte guard (double-buffered input + f32 temps).
        pos_vmem = max(128, ((vmem_limit_bytes * 3 // 4)
                             // max(C * (2 * itemsize + 12), 1)) // 128 * 128)
        tile_pos = min(tile_pos, pos_vmem)
    # v7x megacore: if the batch dim alone can't feed two cores, split HW.
    if N == 1 and tile_pos == HW and HW >= 256:
        tile_pos = pl.cdiv(pl.cdiv(HW, 2), 128) * 128
    num_pos_tiles = pl.cdiv(HW, tile_pos)

    per_pos = pl.pallas_call(
        _hloss_chw_kernel,
        out_shape=jax.ShapeDtypeStruct((N, 1, HW), jnp.float32),
        grid=(N, num_pos_tiles),
        in_specs=[pl.BlockSpec((1, C, tile_pos), lambda n, t: (n, 0, t))],
        out_specs=pl.BlockSpec((1, 1, tile_pos), lambda n, t: (n, 0, t)),
        compiler_params=pltpu.CompilerParams(
            dimension_semantics=("parallel", "parallel"),
            vmem_limit_bytes=vmem_limit_bytes,
        ),
    )(x3)
    return jnp.sum(per_pos)


def _hloss_ref(x: jax.Array) -> jax.Array:
    xf = x.astype(jnp.float32)
    sm = jax.nn.softmax(xf, axis=1)
    lsm = jax.nn.log_softmax(xf, axis=1)
    return -jnp.sum(sm * lsm)


if __name__ == "__main__":
    key = jax.random.PRNGKey(0)
    k1, k2, k3 = jax.random.split(key, 3)

    # 4-D activations (softmax over dim=1), plain 2-D logits, ragged bf16 batch.
    x1 = jax.random.normal(k1, (2, 4, 16, 16), dtype=jnp.float32)
    x2 = jax.random.normal(k2, (16, 128), dtype=jnp.float32)
    x3 = jax.random.normal(k3, (13, 100), dtype=jnp.bfloat16)

    for xin in (x1, x2, x3):
        out = jax.block_until_ready(hloss(xin))
        ref = _hloss_ref(xin)
        assert jnp.allclose(out, ref, rtol=1e-4, atol=1e-4), (xin.shape, out, ref)

    print("KERNEL_OK")
</pallas_src>

<mosaic_0001>
module attributes {stable_mosaic.version = 11 : i64} {
  func.func @_hloss_chw_kernel(%arg0: i32, %arg1: i32, %arg2: memref<1x4x256xf32, #tpu.memory_space<vmem>>, %arg3: memref<1x1x256xf32, #tpu.memory_space<vmem>>) attributes {dimension_semantics = [#tpu.dimension_semantics<parallel>, #tpu.dimension_semantics<parallel>], iteration_bounds = array<i64: 2, 1>, scalar_prefetch = 0 : i64, scratch_operands = 0 : i64, tpu.core_type = #tpu.core_type<tc>, window_params = [{transform_indices = @transform_0, window_bounds = array<i64: 1, 4, 256>}, {transform_indices = @transform_1, window_bounds = array<i64: 1, 1, 256>}]} {
    %c0 = arith.constant 0 : index
    %c0_0 = arith.constant 0 : index
    %c0_1 = arith.constant 0 : index
    %0 = vector.load %arg2[%c0, %c0_0, %c0_1] : memref<1x4x256xf32, #tpu.memory_space<vmem>>, vector<1x4x256xf32>
    %cst = arith.constant dense<0xFF800000> : vector<1x256xf32>
    %1 = vector.multi_reduction <maximumf>, %0, %cst [1] : vector<1x4x256xf32> to vector<1x256xf32>
    %2 = vector.shape_cast %1 : vector<1x256xf32> to vector<1x1x256xf32>
    %3 = vector.broadcast %2 : vector<1x1x256xf32> to vector<1x4x256xf32>
    %4 = arith.subf %0, %3 : vector<1x4x256xf32>
    %5 = math.exp %4 : vector<1x4x256xf32>
    %cst_2 = arith.constant dense<0.000000e+00> : vector<1x256xf32>
    %6 = vector.multi_reduction <add>, %5, %cst_2 [1] : vector<1x4x256xf32> to vector<1x256xf32>
    %7 = vector.shape_cast %6 : vector<1x256xf32> to vector<1x1x256xf32>
    %8 = arith.mulf %5, %4 : vector<1x4x256xf32>
    %cst_3 = arith.constant dense<0.000000e+00> : vector<1x256xf32>
    %9 = vector.multi_reduction <add>, %8, %cst_3 [1] : vector<1x4x256xf32> to vector<1x256xf32>
    %10 = vector.shape_cast %9 : vector<1x256xf32> to vector<1x1x256xf32>
    %11 = math.log %7 : vector<1x1x256xf32>
    %12 = arith.divf %10, %7 : vector<1x1x256xf32>
    %13 = arith.subf %11, %12 : vector<1x1x256xf32>
    %c0_4 = arith.constant 0 : index
    %c0_5 = arith.constant 0 : index
    %c0_6 = arith.constant 0 : index
    %14 = vector.load %arg3[%c0_4, %c0_5, %c0_6] : memref<1x1x256xf32, #tpu.memory_space<vmem>>, vector<1x1x256xf32>
    tpu.vector_store %arg3[%c0_4, %c0_5, %c0_6], %13 {strides = array<i32>} : memref<1x1x256xf32, #tpu.memory_space<vmem>>, vector<1x1x256xf32>,
    return
  }
  func.func @transform_0(%arg0: i32, %arg1: i32) -> (i32, i32, i32) {
    %c0_i32 = arith.constant 0 : i32
    %c0_i32_0 = arith.constant 0 : i32
    return %arg0, %c0_i32, %arg1 : i32, i32, i32
  }
  func.func @transform_1(%arg0: i32, %arg1: i32) -> (i32, i32, i32) {
    %c0_i32 = arith.constant 0 : i32
    %c0_i32_0 = arith.constant 0 : i32
    return %arg0, %c0_i32, %arg1 : i32, i32, i32
  }
}

</mosaic_0001>

<bundles_post_ra>
// kernel: tpu_custom_call.1
= control target key start
LH: loop header
LB: loop body
LE: loop exit
PB: predicated region body
PF: predicated region fallthrough
CT: control target
= control target key end

     0   :  { %6 = vsyncpa [#allocation3], 0  ;;  %s703_s0 = inlined_call_operand.hbm [shape: f32[2,4,256], index: 0, kind: input, shape index: {}]   ;;  %s704_s1 = inlined_call_operand.hbm [shape: f32[2,1,256], index: 1, kind: output, shape index: {}]  }
   0x1   :  { %8 = vsyncpa [#allocation3 + $0x1], 0 }
   0x2   :  { %9 = vsyncpa [#allocation4], 0 }
   0x3   :  { %11 = vsyncpa [#allocation4 + $0x1], 0  ;;  %s562_s6 = smov 0   ;;  %s564_s7 = smov 0  }
   0x4   :  { %s566_s8 = smov 0   ;;  %s568_s9 = smov 0  }
   0x5   :  { %s570_s10 = smov 0   ;;  %s572_s11 = smov 0  }
   0x6 LB: > { %s348_s12 = sadd.s32 4294967295, %s547_s11   ;;  %s349_s13 = sadd.s32 4294967294, %s547_s11   ;;  %s547_s11 = sphi %s572_s11, %s17_s11   ;;  %s543_s10 = sphi %s570_s10, %s716_s10   ;;  %s539_s9 = sphi %s568_s9, %s715_s9   ;;  %s535_s8 = sphi %s566_s8, %s714_s8   ;;  %s531_s7 = sphi %s564_s7, %s713_s7   ;;  %s527_s6 = sphi %s562_s6, %s712_s6  }
   0x7   : > { %s29_s14 = sadd.s32 1, %s543_s10  ;;  %s38_s15 = sadd.s32 1, %s535_s8 }
   0x8   : > { %p31_p0 = scmp.ge.s32.totalorder %s29_s14, 2  ;;  %p45_p1 = scmp.ne.s32.totalorder %s535_s8, %s531_s7 }
   0x9   : > { %p46_p2 = scmp.eq.s32.totalorder %s547_s11, 0  ;;  %p51_p3 = scmp.ne.s32.totalorder %s531_s7, %s527_s6 }
   0xa   : > { %s718_s14 = smov (%p31_p0, %s29_s14), 0  ;;  %p52_p5 = scmp.eq.s32.totalorder %s348_s12, 0 }
   0xb   : > { %p603_p4 = por %p46_p2, %p45_p1  ;;  %s33_s17 = ssub.s32 %s543_s10, %s718_s14 }
   0xc   : > { %p77_p6 = scmp.eq.s32.totalorder %s348_s12, 1  ;;  %p36_p7 = scmp.eq.s32.totalorder %s33_s17, 0 }
   0xd   : > { %p609_p8 = por %p52_p5, %p51_p3  ;;  %p83_p10 = scmp.eq.s32.totalorder %s349_s13, 1 }
   0xe   : > { %p613_p9 = por %p77_p6, %p45_p1  ;;  %p377_p13 = scmp.lt.s32.totalorder %s547_s11, 2 }
   0xf   : > { %s618_s20 = scalar_select %p36_p7, %s535_s8, %s38_s15  }
  0x10   : > { %p620_p11 = por %p83_p10, %p51_p3  ;;  %s103_s22 = sand.u32 1, %s535_s8  }
  0x11   : > { %s352_s23 = sshll.u32 %s103_s22, 3  ;;  %s363_s24 = sshll.u32 %s543_s10, 7 }
  0x12   : > { %s708_s21 = scalar_select %p620_p11, 1, 0 }
  0x13   : > { %s115_s27 = scalar_lea.hbm %s703_s0, %s363_s24  ;;  %s107_s28 = scalar_lea.vmem [#allocation2], %s352_s23 }
  0x14   : > { %s117_s29 = sshll.u32 %s107_s28, 4  ;;  %p633_p0 = pnand %p377_p13, %p603_p4  ;;  %s118_s29 = int_to_ptr.vmem [resolvable:$true] %s117_s29 }
  0x15   : > { %p355_p1 = scmp.ge.s32.totalorder %s547_s11, 1  ;;  %p122_p2 = scmp.lt.s32.totalorder %s547_s11, 3 }
  0x16   : > { %s104_s2 = scalar_lea.sflag [#allocation3], %s103_s22  ;;  %p441_p3 = pneg %p633_p0 }
  0x17   : > { %s452_s3 = scalar_lea.vmem %s118_s29, 128  ;;  %s549_s4 = smov [#allocation2]  }
  0x18   : > { %p453_p5 = scmp.ne.s32.totalorder %s118_s29, %s452_s3  ;;  %s457_s5 = sshll.u32 %s549_s4, 4  ;;  %s458_s5 = int_to_ptr.vmem [resolvable:$false] %s457_s5 }
  0x19   : > { %s459_s12 = scalar_lea.vmem %s458_s5, 256  ;;  %p460_p10 = scmp.lt.s32.totalorder %s118_s29, %s458_s5 }
  0x1a   : > { %p455_p6 = pnand %p453_p5, %p441_p3  ;;  %p461_p12 = scmp.lt.s32.totalorder %s459_s12, %s452_s3 }
  0x1c   : > { %p456_p7 = pneg %p455_p6  ;;  %p462_p4 = por %p461_p12, %p460_p10 }
  0x1e   : > { %p463_p13 = pnand %p462_p4, %p456_p7 }
  0x20   : > { %466 = shalt.err (!%p463_p13)
}
  0x21   : > { %372 = dma.hbm_to_vmem [thread:$0]  (!%p633_p0), %s115_s27, 128, %s118_s29, %s104_s2  }
  0x22   : > { %p123_p11 = pnand %p355_p1, %p122_p2 }
  0x23   : > { %s648_s13 = sand.u32 (!%p123_p11), 1, %s531_s7  }
  0x24   : > { %126 = sbr.rel (%p123_p11) target bundleno = 131 (0x83), region = 24  ;;  %s356_s15 = sshll.u32 (!%p123_p11), %s648_s13, 3 }
  0x25   : > { %s129_s16 = scalar_lea.sflag (!%p123_p11), [#allocation3], %s648_s13  ;;  %s132_s17 = scalar_lea.vmem (!%p123_p11), [#allocation2], %s356_s15 }
  0x29   : > { %518 = dma.done.wait (%p609_p8), %s129_s16, 128  }
  0x2a   : > { %520 = vsyncadd (%p609_p8), %s129_s16, 4294967168  ;;  %vm157_vm0 = vcmask 1043456   ;;  %v153_v0 = vld [vmem:[%s132_s17] sm:$0xff]  ;;  %v550_v50 = vmov 1966171168   ;;  %v230_v52 = vlaneseq  ;;  %s357_s18 = sshll.u32 %s648_s13, 1 }
  0x2b   : > { %v155_v1 = vcombine.high %v153_v0, %v153_v0  ;;  %v158_v2 = vsel %vm157_vm0, %v153_v0, -inf  ;;  %v228_v51 = vunpack.c.l.s4 %v550_v50  ;;  %s150_s22 = scalar_lea.vmem [#allocation5], %s357_s18  ;;  %s364_s24 = sshll.u32 %s539_s9, 5 }
  0x2c   : > { %v159_v3 = vrot.slane %v158_v2, 4  ;;  %v231_v60 = vshrl.u32 %v230_v52, 7  ;;  %s264_s23 = sshll.u32 %s150_s22, 4  ;;  %vm244_vm1 = vcmp.lt.s32.totalorder %v230_v52, 256  ;;  %s262_s27 = scalar_lea.hbm %s704_s1, %s364_s24  ;;  %s265_s23 = int_to_ptr.vmem [resolvable:$true] %s264_s23 }
  0x2d   : > { %v165_v4 = vsel %vm157_vm0, %v155_v1, -inf  ;;  %v229_v59 = vunpack.c.0.s8 %v228_v51  ;;  %s248_s28 = scalar_lea.sflag [#allocation4], %s648_s13  ;;  %s467_s29 = scalar_lea.vmem %s265_s23, 32 }
  0x2e   : > { %v160_v5 = vmax.f32 %v158_v2, %v159_v3  ;;  %v166_v6 = vrot.slane %v165_v4, 4  ;;  %p468_p8 = scmp.ne.s32.totalorder %s265_s23, %s467_s29  ;;  %s551_s30 = smov [#allocation5]  }
  0x2f   : > { %v232_v2 = vsub.s32 %v229_v59, %v231_v60  ;;  %s471_s2 = sshll.u32 %s551_s30, 4  ;;  %s472_s2 = int_to_ptr.vmem [resolvable:$false] %s471_s2 }
  0x30   : > { %v161_v7 = vrot.slane %v160_v5, 2  ;;  %v167_v8 = vmax.f32 %v165_v4, %v166_v6  ;;  %p469_p11 = pnand %p468_p8, %p613_p9  ;;  %s473_s3 = scalar_lea.vmem %s472_s2, 64 }
  0x31   : > { %p474_p0 = scmp.lt.s32.totalorder %s265_s23, %s472_s2  ;;  %p475_p1 = scmp.lt.s32.totalorder %s473_s3, %s467_s29 }
  0x32   : > { %v162_v9 = vmax.f32 %v160_v5, %v161_v7  ;;  %v168_v10 = vrot.slane %v167_v8, 2  ;;  %p470_p12 = pneg %p469_p11 }
  0x33   : > { %p476_p2 = por %p475_p1, %p474_p0 }
  0x34   : > { %v163_v11 = vrot.slane %v162_v9, 1  ;;  %v169_v12 = vmax.f32 %v167_v8, %v168_v10 }
  0x35   : > { %p477_p3 = pnand %p476_p2, %p470_p12 }
  0x36   : > { %v164_v13 = vmax.f32 %v162_v9, %v163_v11  ;;  %v170_v14 = vrot.slane %v169_v12, 1 }
  0x38   : > { %v171_v15 = vmax.f32 %v169_v12, %v170_v14 }
  0x3a   : > { %v174_v16 = vcombine.low %v164_v13, %v171_v15 }
  0x3c   : > { %v176_v17 = vsub.f32 %v153_v0, %v174_v16 }
  0x3e   : > { %v177_v18 = vmul.f32 1.442695, %v176_v17 }
  0x40   : > { %429 = vpow2.f32 %v177_v18 }
  0x4d   : > { %v430_v19 = vpop.eup %429 }
  0x4e   : > { %v196_v20 = vmul.f32 %v430_v19, %v176_v17  ;;  %v180_v21 = vcombine.high %v430_v19, %v430_v19  ;;  %v182_v22 = vsel %vm157_vm0, %v430_v19, 0.0 }
  0x4f   : > { %v183_v23 = vrot.slane %v182_v22, 4 }
  0x50   : > { %v198_v24 = vcombine.high %v196_v20, %v196_v20  ;;  %v200_v25 = vsel %vm157_vm0, %v196_v20, 0.0  ;;  %v189_v26 = vsel %vm157_vm0, %v180_v21, 0.0 }
  0x51   : > { %v184_v27 = vadd.f32 %v183_v23, %v182_v22  ;;  %v190_v28 = vrot.slane %v189_v26, 4  ;;  %v201_v29 = vrot.slane %v200_v25, 4 }
  0x52   : > { %v207_v30 = vsel %vm157_vm0, %v198_v24, 0.0 }
  0x53   : > { %v185_v31 = vrot.slane %v184_v27, 2  ;;  %v191_v32 = vadd.f32 %v190_v28, %v189_v26  ;;  %v208_v33 = vrot.slane %v207_v30, 4  ;;  %v202_v36 = vadd.f32 %v201_v29, %v200_v25 }
  0x55   : > { %v186_v34 = vadd.f32 %v185_v31, %v184_v27  ;;  %v192_v35 = vrot.slane %v191_v32, 2  ;;  %v209_v39 = vadd.f32 %v208_v33, %v207_v30  ;;  %v203_v42 = vrot.slane %v202_v36, 2 }
  0x57   : > { %v187_v37 = vrot.slane %v186_v34, 1  ;;  %v193_v38 = vadd.f32 %v192_v35, %v191_v32  ;;  %v210_v44 = vrot.slane %v209_v39, 2  ;;  %v204_v45 = vadd.f32 %v203_v42, %v202_v36 }
  0x59   : > { %v188_v40 = vadd.f32 %v187_v37, %v186_v34  ;;  %v194_v41 = vrot.slane %v193_v38, 1  ;;  %v211_v46 = vadd.f32 %v210_v44, %v209_v39  ;;  %v205_v47 = vrot.slane %v204_v45, 1 }
  0x5b   : > { %v195_v43 = vadd.f32 %v194_v41, %v193_v38  ;;  %431 = vlog2.f32 %v188_v40  ;;  %v212_v48 = vrot.slane %v211_v46, 1  ;;  %v206_v49 = vadd.f32 %v205_v47, %v204_v45 }
  0x5c   : > { %433 = vrcp.f32 %v188_v40 }
  0x5d   : > { %435 = vlog2.f32 %v195_v43  ;;  %v213_v54 = vadd.f32 %v212_v48, %v211_v46 }
  0x5e   : > { %437 = vrcp.f32 %v195_v43 }
  0x68   : > { %v432_v53 = vpop.eup %431 }
  0x69   : > { %v434_v55 = vpop.eup %433  ;;  %v215_v56 = vmul.f32 0.6931472, %v432_v53 }
  0x6a   : > { %v436_v57 = vpop.eup %435  ;;  %v219_v58 = vmul.f32 %v434_v55, %v206_v49 }
  0x6b   : > { %v438_v61 = vpop.eup %437  ;;  %v217_v62 = vmul.f32 0.6931472, %v436_v57 }
  0x6c   : > { %v221_v63 = vmul.f32 %v438_v61, %v213_v54  ;;  %v222_v0 = vsub.f32 %v215_v56, %v219_v58 }
  0x6e   : > { %v223_v1 = vsub.f32 %v217_v62, %v221_v63 }
  0x70   : > { %v226_v3 = vcombine.low %v222_v0, %v223_v1 }
  0x72   : > { %v233_v4 = vrot.slane %v226_v3, %v232_v2 }
  0x74   : > { %v240_v5 = vrot.slane %v233_v4, %v232_v2 }
  0x76   : > { %246 = vst.msk [vmem:[%s150_s22] sm:$0x3] %vm244_vm1, %v240_v5 }
  0x77   : > { %480 = shalt.err (!%p477_p3)
}
  0x78   : > { %s481_s9 = scalar_lea.hbm %s262_s27, 32  ;;  %s485_s12 = scalar_lea.hbm %s704_s1, 64 }
  0x79   : > { %p482_p5 = scmp.ne.s32.totalorder %s262_s27, %s481_s9  ;;  %p486_p10 = scmp.lt.s32.totalorder %s262_s27, %s704_s1 }
  0x7a   : > { %p487_p4 = scmp.lt.s32.totalorder %s485_s12, %s481_s9 }
  0x7b   : > { %p483_p6 = pnand %p482_p5, %p613_p9 }
  0x7c   : > { %p488_p13 = por %p487_p4, %p486_p10 }
  0x7d   : > { %p484_p7 = pneg %p483_p6 }
  0x7f   : > { %p489_p8 = pnand %p488_p13, %p484_p7 }
  0x81   : > { %492 = shalt.err (!%p489_p8)
}
  0x82   : > { %367 = dma.vmem_to_hbm [thread:$0]  (%p613_p9), %s265_s23, 32, %s262_s27, %s248_s28  }
  0x83 PF: > { %s276_s16 = sand.u32 1, %s527_s6   ;;  %p710_p11 = scmp.ne.s32.totalorder %s708_s21, 0 }
  0x84   : > { %p711_p12 = scmp.ge.s32.totalorder %s547_s11, 2  ;;  %s277_s17 = scalar_lea.sflag [#allocation4], %s276_s16 }
  0x86   : > { %p374_p0 = pnand %p711_p12, %p710_p11 }
  0x88   : > { %p375_p1 = pneg %p374_p0 }
  0x8a   : > { %522 = dma.done.wait (%p375_p1), %s277_s17, 32  }
  0x8b   : > { %524 = vsyncadd (%p375_p1), %s277_s17, 4294967264  ;;  %s17_s11 = sadd.s32 1, %s547_s11   ;;  %s712_s6 = smov %s531_s7 }
  0x8c   : > { %p14_p2 = scmp.ge.s32.totalorder %s17_s11, 4   ;;  %s713_s7 = smov %s535_s8 }
  0x8d   : > { %s714_s8 = smov %s618_s20  ;;  %s715_s9 = smov %s543_s10 }
  0x8e   : > { %s716_s10 = smov %s718_s14  ;;  %16 = sbr.rel (!%p14_p2) target bundleno = 6 (0x6), region = 69 }
  0x93   :  { %282 = vsyncpa [#allocation3], 1 }
  0x94   :  { %284 = vsyncpa [#allocation3 + $0x1], 1 }
  0x95   :  { %285 = vsyncpa [#allocation4], 1 }
  0x96   :  { %287 = vsyncpa [#allocation4 + $0x1], 1 }

</bundles_post_ra>
